<compile_context>
chip_gen: v6e
topology: v6e:2x2x1
jax: 0.10.0
libtpu: 0.0.40
codegen_flags: <defaults>
</compile_context>

<pallas_src>
import functools

import jax
import jax.numpy as jnp
from jax.experimental import pallas as pl
from jax.experimental.pallas import tpu as pltpu


# ---------------------------------------------------------------------------
# helpers
# ---------------------------------------------------------------------------
def _round_up(x, m):
    return ((x + m - 1) // m) * m


def _vmem_limit_bytes():
    """Scoped-VMEM limit: ~85% of physical VMEM (v5e/v6e 128 MiB, v7x 64 MiB)."""
    cap = 64 * 1024 * 1024
    try:
        cap = int(pltpu.get_tpu_info().vmem_capacity_bytes)
    except Exception:
        pass
    return int(cap * 0.85)


# Conservative fused-path working-set budget, safe on every TPU generation.
_FUSED_VMEM_BUDGET = 24 * 1024 * 1024


# ---------------------------------------------------------------------------
# Pallas kernels
# ---------------------------------------------------------------------------
def _resize_fused_kernel(img_ref, wh_ref, wwt_ref, out_ref, *, channels, in_h,
                         width_first):
    """All channels in one invocation (no grid): out[c] = Wh @ img[c] @ Ww^T."""
    wh = wh_ref[...]      # (new_h_pad, H)
    wwt = wwt_ref[...]    # (W, new_w_pad)
    img = img_ref[...]    # (C*H, W)
    if width_first:
        # one big matmul for the width pass: M = C*H
        tmp = jnp.dot(img, wwt, preferred_element_type=jnp.float32)
        tmp = tmp.astype(img.dtype)           # keep the 2nd matmul MXU-native
        for ch in range(channels):
            out_ref[ch] = jnp.dot(
                wh, tmp[ch * in_h:(ch + 1) * in_h, :],
                preferred_element_type=jnp.float32).astype(out_ref.dtype)
    else:
        for ch in range(channels):
            t = jnp.dot(wh, img[ch * in_h:(ch + 1) * in_h, :],
                        preferred_element_type=jnp.float32).astype(wwt.dtype)
            out_ref[ch] = jnp.dot(
                t, wwt, preferred_element_type=jnp.float32).astype(out_ref.dtype)


def _width_pass_kernel(img_ref, wwt_ref, out_ref):
    # one (TM, W) row strip covering all channels at once (big MXU M dimension)
    out_ref[...] = jnp.dot(img_ref[...], wwt_ref[...],
                           preferred_element_type=jnp.float32).astype(out_ref.dtype)


def _height_pass_kernel(wh_ref, x_ref, out_ref):
    # one channel, one lane strip: out[c, :, strip] = Wh @ x[c, :, strip]
    out_ref[0] = jnp.dot(wh_ref[...], x_ref[0],
                         preferred_element_type=jnp.float32).astype(out_ref.dtype)


# ---------------------------------------------------------------------------
# pallas_call wrappers
# ---------------------------------------------------------------------------
def _resize_fused(img2d, wh, wwt, channels, in_h, vmem_limit):
    ch_h, in_w = img2d.shape
    hp = wh.shape[0]
    wp = wwt.shape[1]
    # pick the contraction order that minimizes MXU FLOPs
    flops_wfirst = ch_h * in_w * wp + channels * hp * in_h * wp
    flops_hfirst = channels * hp * in_h * in_w + channels * hp * in_w * wp
    kernel = functools.partial(_resize_fused_kernel, channels=channels,
                               in_h=in_h,
                               width_first=flops_wfirst <= flops_hfirst)
    return pl.pallas_call(
        kernel,
        out_shape=jax.ShapeDtypeStruct((channels, hp, wp), jnp.float32),
        in_specs=[pl.BlockSpec(memory_space=pltpu.MemorySpace.VMEM)] * 3,
        out_specs=pl.BlockSpec(memory_space=pltpu.MemorySpace.VMEM),
        compiler_params=pltpu.CompilerParams(vmem_limit_bytes=vmem_limit),
    )(img2d, wh, wwt)


def _width_pass_tiled(img2d, wwt, vmem_limit):
    m, in_w = img2d.shape
    wp = wwt.shape[1]
    tm = m if m <= 256 else 256          # multiple of 8 (or the full dim)
    return pl.pallas_call(
        _width_pass_kernel,
        out_shape=jax.ShapeDtypeStruct((m, wp), img2d.dtype),
        grid=(pl.cdiv(m, tm),),
        in_specs=[pl.BlockSpec((tm, in_w), lambda i: (i, 0)),
                  pl.BlockSpec((in_w, wp), lambda i: (0, 0))],
        out_specs=pl.BlockSpec((tm, wp), lambda i: (i, 0)),
        compiler_params=pltpu.CompilerParams(
            dimension_semantics=("parallel",),
            vmem_limit_bytes=vmem_limit),
    )(img2d, wwt)


def _height_pass_tiled(x3d, wh, vmem_limit):
    channels, in_h, wp = x3d.shape
    hp = wh.shape[0]
    tn = wp if wp <= 512 else 512        # multiple of 128 (or the full dim)
    return pl.pallas_call(
        _height_pass_kernel,
        out_shape=jax.ShapeDtypeStruct((channels, hp, wp), jnp.float32),
        grid=(channels, pl.cdiv(wp, tn)),
        in_specs=[pl.BlockSpec((hp, in_h), lambda c, j: (0, 0)),
                  pl.BlockSpec((1, in_h, tn), lambda c, j: (c, 0, j))],
        out_specs=pl.BlockSpec((1, hp, tn), lambda c, j: (c, 0, j)),
        compiler_params=pltpu.CompilerParams(
            dimension_semantics=("parallel", "parallel"),
            vmem_limit_bytes=vmem_limit),
    )(wh, x3d)


# ---------------------------------------------------------------------------
# Resampling weight construction (glue, plain JAX)
# ---------------------------------------------------------------------------
def _interp_weights(in_size, out_size, antialias, out_pad, dtype):
    """PIL/torchvision-style bilinear (triangle) resampling weights.

    Returns a row-stochastic (out_pad, in_size) matrix; rows beyond out_size are
    zero padding (lane/sublane alignment, sliced off in the wrapper).  Antialias
    widens the triangle support by the downscale factor (no effect when
    upscaling) -- matches torchvision resize(..., antialias=True).
    """
    scale = in_size / out_size
    support = max(scale, 1.0) if antialias else 1.0
    i = jnp.arange(out_size, dtype=jnp.float32)
    j = jnp.arange(in_size, dtype=jnp.float32)
    center = (i + 0.5) * scale
    x = (j[None, :] + 0.5 - center[:, None]) / support
    w = jnp.maximum(0.0, 1.0 - jnp.abs(x))
    w = w / jnp.sum(w, axis=1, keepdims=True)
    if out_pad > out_size:
        w = jnp.pad(w, ((0, out_pad - out_size), (0, 0)))
    return w.astype(dtype)


# ---------------------------------------------------------------------------
# Resize module (forward semantics of the PyTorch module)
# ---------------------------------------------------------------------------
class Resize:
    def __init__(self, size=None, interpolation="bilinear", max_size=None,
                 antialias=True, compute_dtype=jnp.bfloat16, _force_tiled=False):
        if isinstance(size, int):
            size = [size]
        elif isinstance(size, (list, tuple)) and len(size) in {1, 2}:
            size = list(size)
        elif size is None:
            if not isinstance(max_size, int):
                raise ValueError(
                    f"max_size must be an integer when size is None, got {max_size}")
        else:
            raise ValueError(
                f"size must be int, 1- or 2-sequence, or None, got {size}")
        if interpolation != "bilinear":
            # TODO(synk): only InterpolationMode.BILINEAR is implemented here.
            raise NotImplementedError("only bilinear interpolation supported")
        self.size = size
        self.max_size = max_size
        self.antialias = antialias
        self.compute_dtype = compute_dtype
        self._force_tiled = _force_tiled

    def _output_size(self, h, w):
        if self.size is not None and len(self.size) == 2:
            return int(self.size[0]), int(self.size[1])
        short, long = (w, h) if w <= h else (h, w)
        if self.size is None:
            new_long = int(self.max_size)
            new_short = int(new_long * short / long)
        else:
            new_short = int(self.size[0])
            new_long = int(new_short * long / short)
            if self.max_size is not None and new_long > self.max_size:
                new_short = int(self.max_size * new_short / new_long)
                new_long = int(self.max_size)
        new_w, new_h = (new_short, new_long) if w <= h else (new_long, new_short)
        return new_h, new_w

    def __call__(self, image, bboxes):
        c = int(image.shape[0])
        h, w = int(image.shape[-2]), int(image.shape[-1])
        new_h, new_w = self._output_size(h, w)
        hp = _round_up(new_h, 8)      # sublane-aligned output height
        wp = _round_up(new_w, 128)    # lane-dense output width (unmasked stores)

        cd = self.compute_dtype
        wh = _interp_weights(h, new_h, self.antialias, hp, cd)     # (hp, h)
        ww = _interp_weights(w, new_w, self.antialias, wp, cd)     # (wp, w)
        wwt = ww.T                                                 # (w, wp)
        img2d = image.astype(cd).reshape(c * h, w)                 # width-pass M = C*H

        vmem_limit = _vmem_limit_bytes()
        bpe = jnp.dtype(cd).itemsize
        fused_bytes = (c * h * w * bpe + hp * h * bpe + w * wp * bpe
                       + c * h * wp * 4 + 2 * c * hp * wp * 4)
        use_tiled = self._force_tiled or (2 * fused_bytes >
                                          min(_FUSED_VMEM_BUDGET, vmem_limit))
        if use_tiled:
            # TODO(synk): exploit the banded structure of Wh/Ww (scalar-prefetch
            # K-tiling that skips all-zero weight blocks) for extreme downscales.
            x = _width_pass_tiled(img2d, wwt, vmem_limit)          # (c*h, wp)
            x = x.reshape(c, h, wp)
            out_pad = _height_pass_tiled(x, wh, vmem_limit)        # (c, hp, wp) f32
        else:
            out_pad = _resize_fused(img2d, wh, wwt, c, h, vmem_limit)

        out = out_pad[:, :new_h, :new_w]
        if jnp.issubdtype(image.dtype, jnp.integer):
            info = jnp.iinfo(image.dtype)
            out = jnp.clip(jnp.round(out), info.min, info.max)
        new_image = out.astype(image.dtype)

        # resize_bboxes: scale = cat(flip(new/cur), flip(new/cur)).  A (N, 4)
        # broadcast multiply is not worth a kernel launch -> plain JAX.
        scale = jnp.asarray([new_w / w, new_h / h, new_w / w, new_h / h],
                            dtype=bboxes.dtype)
        new_bboxes = bboxes * scale
        return new_image, new_bboxes


# ---------------------------------------------------------------------------
if __name__ == "__main__":
    key = jax.random.PRNGKey(0)
    k_img, k_box, k_img2, k_img3 = jax.random.split(key, 4)
    image = jax.random.uniform(k_img, (3, 16, 16), dtype=jnp.float32)
    bboxes = jax.random.uniform(k_box, (8, 4), dtype=jnp.float32) * 16.0

    # 1) fused path, bf16 compute: 16x16 -> 32x32 upscale
    resize = Resize(size=32, antialias=True)
    new_image, new_bboxes = resize(image, bboxes)
    jax.block_until_ready((new_image, new_bboxes))
    assert new_image.shape == (3, 32, 32) and new_image.dtype == image.dtype
    assert new_bboxes.shape == (8, 4)
    ref_img = jax.image.resize(image, (3, 32, 32), method="linear", antialias=True)
    assert float(jnp.max(jnp.abs(new_image - ref_img))) < 2e-2
    ref_box = bboxes * 2.0
    assert float(jnp.max(jnp.abs(new_bboxes - ref_box))) < 1e-5

    # 2) fused path, f32 compute: tight numerical check of the resampling weights
    out_f32, _ = Resize(size=32, compute_dtype=jnp.float32)(image, bboxes)
    jax.block_until_ready(out_f32)
    assert float(jnp.max(jnp.abs(out_f32 - ref_img))) < 1e-4

    # 3) tiled two-pass path (forced at a small size): antialiased downscale
    image2 = jax.random.uniform(k_img2, (3, 48, 80), dtype=jnp.float32)
    out2, box2 = Resize(size=(24, 40), _force_tiled=True)(image2, bboxes)
    jax.block_until_ready((out2, box2))
    assert out2.shape == (3, 24, 40)
    ref2 = jax.image.resize(image2, (3, 24, 40), method="linear", antialias=True)
    assert float(jnp.max(jnp.abs(out2 - ref2))) < 2e-2

    # 4) fused path, width-first contraction order (heavy width downscale)
    image3 = jax.random.uniform(k_img3, (3, 32, 512), dtype=jnp.float32)
    out3, _ = Resize(size=(32, 16))(image3, bboxes)
    jax.block_until_ready(out3)
    assert out3.shape == (3, 32, 16)
    ref3 = jax.image.resize(image3, (3, 32, 16), method="linear", antialias=True)
    assert float(jnp.max(jnp.abs(out3 - ref3))) < 2e-2

    print("KERNEL_OK")
</pallas_src>

<mosaic_0001>
module attributes {stable_mosaic.version = 11 : i64} {
  func.func @_resize_fused_kernel(%arg0: memref<48x16xbf16, #tpu.memory_space<vmem>>, %arg1: memref<32x16xbf16, #tpu.memory_space<vmem>>, %arg2: memref<16x128xbf16, #tpu.memory_space<vmem>>, %arg3: memref<3x32x128xf32, #tpu.memory_space<vmem>>) attributes {dimension_semantics = [], scalar_prefetch = 0 : i64, scratch_operands = 0 : i64, tpu.core_type = #tpu.core_type<tc>} {
    %c0 = arith.constant 0 : index
    %c0_0 = arith.constant 0 : index
    %0 = vector.load %arg1[%c0, %c0_0] : memref<32x16xbf16, #tpu.memory_space<vmem>>, vector<32x16xbf16>
    %c0_1 = arith.constant 0 : index
    %c0_2 = arith.constant 0 : index
    %1 = vector.load %arg2[%c0_1, %c0_2] : memref<16x128xbf16, #tpu.memory_space<vmem>>, vector<16x128xbf16>
    %c0_3 = arith.constant 0 : index
    %c0_4 = arith.constant 0 : index
    %2 = vector.load %arg0[%c0_3, %c0_4] : memref<48x16xbf16, #tpu.memory_space<vmem>>, vector<48x16xbf16>
    %3 = vector.extract_strided_slice %2 {offsets = [0, 0], sizes = [16, 16], strides = [1, 1]} : vector<48x16xbf16> to vector<16x16xbf16>
    %cst = arith.constant dense<0.000000e+00> : vector<32x16xf32>
    %4 = tpu.matmul %0, %3, %cst {dimension_numbers = #tpu.dot_dimension_numbers<[1], [0], [0], [1], [0, 0, 1, 1], [], []>} : vector<32x16xbf16>, vector<16x16xbf16>, vector<32x16xf32> -> vector<32x16xf32>
    %5 = arith.truncf %4 : vector<32x16xf32> to vector<32x16xbf16>
    %cst_5 = arith.constant dense<0.000000e+00> : vector<32x128xf32>
    %6 = tpu.matmul %5, %1, %cst_5 {dimension_numbers = #tpu.dot_dimension_numbers<[1], [0], [0], [1], [0, 0, 1, 1], [], []>} : vector<32x16xbf16>, vector<16x128xbf16>, vector<32x128xf32> -> vector<32x128xf32>
    %c0_6 = arith.constant 0 : index
    %c0_7 = arith.constant 0 : index
    %c0_8 = arith.constant 0 : index
    %7 = vector.load %arg3[%c0_6, %c0_7, %c0_8] : memref<3x32x128xf32, #tpu.memory_space<vmem>>, vector<1x32x128xf32>
    %8 = vector.shape_cast %7 : vector<1x32x128xf32> to vector<32x128xf32>
    %9 = vector.shape_cast %6 : vector<32x128xf32> to vector<1x32x128xf32>
    tpu.vector_store %arg3[%c0_6, %c0_7, %c0_8], %9 {strides = array<i32>} : memref<3x32x128xf32, #tpu.memory_space<vmem>>, vector<1x32x128xf32>,
    %10 = vector.extract_strided_slice %2 {offsets = [16, 0], sizes = [16, 16], strides = [1, 1]} : vector<48x16xbf16> to vector<16x16xbf16>
    %cst_9 = arith.constant dense<0.000000e+00> : vector<32x16xf32>
    %11 = tpu.matmul %0, %10, %cst_9 {dimension_numbers = #tpu.dot_dimension_numbers<[1], [0], [0], [1], [0, 0, 1, 1], [], []>} : vector<32x16xbf16>, vector<16x16xbf16>, vector<32x16xf32> -> vector<32x16xf32>
    %12 = arith.truncf %11 : vector<32x16xf32> to vector<32x16xbf16>
    %cst_10 = arith.constant dense<0.000000e+00> : vector<32x128xf32>
    %13 = tpu.matmul %12, %1, %cst_10 {dimension_numbers = #tpu.dot_dimension_numbers<[1], [0], [0], [1], [0, 0, 1, 1], [], []>} : vector<32x16xbf16>, vector<16x128xbf16>, vector<32x128xf32> -> vector<32x128xf32>
    %c1 = arith.constant 1 : index
    %c0_11 = arith.constant 0 : index
    %c0_12 = arith.constant 0 : index
    %14 = vector.load %arg3[%c1, %c0_11, %c0_12] : memref<3x32x128xf32, #tpu.memory_space<vmem>>, vector<1x32x128xf32>
    %15 = vector.shape_cast %14 : vector<1x32x128xf32> to vector<32x128xf32>
    %16 = vector.shape_cast %13 : vector<32x128xf32> to vector<1x32x128xf32>
    tpu.vector_store %arg3[%c1, %c0_11, %c0_12], %16 {strides = array<i32>} : memref<3x32x128xf32, #tpu.memory_space<vmem>>, vector<1x32x128xf32>,
    %17 = vector.extract_strided_slice %2 {offsets = [32, 0], sizes = [16, 16], strides = [1, 1]} : vector<48x16xbf16> to vector<16x16xbf16>
    %cst_13 = arith.constant dense<0.000000e+00> : vector<32x16xf32>
    %18 = tpu.matmul %0, %17, %cst_13 {dimension_numbers = #tpu.dot_dimension_numbers<[1], [0], [0], [1], [0, 0, 1, 1], [], []>} : vector<32x16xbf16>, vector<16x16xbf16>, vector<32x16xf32> -> vector<32x16xf32>
    %19 = arith.truncf %18 : vector<32x16xf32> to vector<32x16xbf16>
    %cst_14 = arith.constant dense<0.000000e+00> : vector<32x128xf32>
    %20 = tpu.matmul %19, %1, %cst_14 {dimension_numbers = #tpu.dot_dimension_numbers<[1], [0], [0], [1], [0, 0, 1, 1], [], []>} : vector<32x16xbf16>, vector<16x128xbf16>, vector<32x128xf32> -> vector<32x128xf32>
    %c2 = arith.constant 2 : index
    %c0_15 = arith.constant 0 : index
    %c0_16 = arith.constant 0 : index
    %21 = vector.load %arg3[%c2, %c0_15, %c0_16] : memref<3x32x128xf32, #tpu.memory_space<vmem>>, vector<1x32x128xf32>
    %22 = vector.shape_cast %21 : vector<1x32x128xf32> to vector<32x128xf32>
    %23 = vector.shape_cast %20 : vector<32x128xf32> to vector<1x32x128xf32>
    tpu.vector_store %arg3[%c2, %c0_15, %c0_16], %23 {strides = array<i32>} : memref<3x32x128xf32, #tpu.memory_space<vmem>>, vector<1x32x128xf32>,
    return
  }
}

</mosaic_0001>

<bundles_post_ra>
// kernel: tpu_custom_call.1
= control target key start
LH: loop header
LB: loop body
LE: loop exit
PB: predicated region body
PF: predicated region fallthrough
CT: control target
= control target key end

     0   :  { %vm44_vm0 = vcmask 130048   ;;  %s576_s0 = inlined_call_operand.vmem [shape: bf16[48,16], index: 0, kind: input, shape index: {}]   ;;  %s577_s1 = inlined_call_operand.vmem [shape: bf16[32,16], index: 1, kind: input, shape index: {}]   ;;  %s578_s2 = inlined_call_operand.vmem [shape: bf16[16,128], index: 2, kind: input, shape index: {}]   ;;  %s579_s3 = inlined_call_operand.hbm [shape: f32[3,32,128], index: 3, kind: output, shape index: {}]  }
   0x1   :  { %v492_v0 = vld [vmem:[%s576_s0] sm:$0xff]   ;;  %v494_v2 = vld [vmem:[%s577_s1 + $0x8] sm:$0xff]   ;;  %v496_v4 = vld [vmem:[%s576_s0 + $0x10] sm:$0xff]  }
   0x2   :  { %v493_v1 = vld [vmem:[%s577_s1] sm:$0xff]   ;;  %453 = vmatprep.subr.bf16.mxu0 %v492_v0  ;;  %v495_v3 = vld [vmem:[%s576_s0 + $0x8] sm:$0xff]  }
   0x3   :  { %454 = vmatpush3.bf16.msra.mxu0 %v492_v0  ;;  %455 = vmatprep.mubr.msk.bf16.mxu0 %vm44_vm0, %v493_v1 }
   0x4   :  { %465 = vmatprep.subr.bf16.mxu0 %v495_v3 }
   0x5   :  { %8 = vsyncpa [#allocation3], 0  ;;  %v497_v5 = vld [vmem:[%s578_s2] sm:$0xff]   ;;  %s520_s0 = smov [#allocation2]  }
   0x6   :  { %456 = vmatmul.mubr.msk.bf16.vlgmr.msra.gmra.mxu0 %vm44_vm0, %v494_v2  ;;  %459 = vmatprep.subr.bf16.mxu1 %v497_v5  ;;  %s406_s2 = sshll.u32 %s520_s0, 4  ;;  %s407_s2 = int_to_ptr.vmem [resolvable:$true] %s406_s2 }
   0x7   :  { %466 = vmatpush3.bf16.msra.mxu0 %v495_v3  ;;  %467 = vmatprep.mubr.msk.bf16.mxu0 %vm44_vm0, %v493_v1  ;;  %s498_s23 = scalar_lea.vmem %s407_s2, 1536  ;;  %p503_p1 = scmp.lt.s32.totalorder %s407_s2, %s407_s2 }
   0x8   :  { %477 = vmatprep.subr.bf16.mxu0 %v496_v4  ;;  %460 = vmatpush3.bf16.msra.mxu1 %v497_v5  ;;  %p499_p0 = scmp.ne.s32.totalorder %s407_s2, %s498_s23  ;;  %p504_p2 = scmp.lt.s32.totalorder %s498_s23, %s498_s23 }
   0x9   :  { %471 = vmatprep.subr.bf16.mxu1 %v497_v5 }
   0xa   :  { %p505_p3 = por %p504_p2, %p503_p1 }
   0xc   :  { %p506_p4 = pnand %p505_p3, %p499_p0 }
   0xe   :  { %468 = vmatmul.mubr.msk.bf16.vlgmr.msra.gmra.mxu0 %vm44_vm0, %v494_v2 }
   0xf   :  { %478 = vmatpush3.bf16.msra.mxu0 %v496_v4  ;;  %479 = vmatprep.mubr.msk.bf16.mxu0 %vm44_vm0, %v493_v1 }
  0x16   :  { %480 = vmatmul.mubr.msk.bf16.vlgmr.msra.gmra.mxu0 %vm44_vm0, %v494_v2 }
  0xc6   :  { %v457_v6 = vpop.f32.mrf.mxu0 }
  0xc8   :  { %v85_v7 = vpop.f32.mrf.mxu0 }
  0xca   :  { %v458_v8 = vpop.f32.mrf.mxu0 }
  0xcb   :  { %v101_v11 = vpack.c.bf16 %v458_v8, %v457_v6 }
  0xcc   :  { %v88_v9 = vpop.f32.mrf.mxu0 }
  0xcd   :  { %v100_v10 = vpack.c.bf16 %v88_v9, %v85_v7 }
  0xce   :  { %v469_v12 = vpop.f32.mrf.mxu0 }
  0xcf   :  { %461 = vmatprep.mubr.msk.bf16.mxu1 %vm44_vm0, %v100_v10 }
  0xd0   :  { %462 = vmatmul.mubr.msk.bf16.vlgmr.msra.gmra.mxu1 %vm44_vm0, %v101_v11  ;;  %v207_v13 = vpop.f32.mrf.mxu0 }
  0xd1   :  { %472 = vmatpush3.bf16.msra.mxu1 %v497_v5 }
  0xd2   :  { %v470_v14 = vpop.f32.mrf.mxu0  ;;  %483 = vmatprep.subr.bf16.mxu1 %v497_v5 }
  0xd3   :  { %v223_v17 = vpack.c.bf16 %v470_v14, %v469_v12 }
  0xd4   :  { %v210_v15 = vpop.f32.mrf.mxu0 }
  0xd5   :  { %v222_v16 = vpack.c.bf16 %v210_v15, %v207_v13 }
  0xd6   :  { %v481_v18 = vpop.f32.mrf.mxu0 }
  0xd7   :  { %473 = vmatprep.mubr.msk.bf16.mxu1 %vm44_vm0, %v222_v16 }
  0xd8   :  { %474 = vmatmul.mubr.msk.bf16.vlgmr.msra.gmra.mxu1 %vm44_vm0, %v223_v17  ;;  %v324_v19 = vpop.f32.mrf.mxu0 }
  0xd9   :  { %484 = vmatpush3.bf16.msra.mxu1 %v497_v5 }
  0xda   :  { %v482_v20 = vpop.f32.mrf.mxu0 }
  0xdb   :  { %v340_v23 = vpack.c.bf16 %v482_v20, %v481_v18 }
  0xdc   :  { %v327_v21 = vpop.f32.mrf.mxu0 }
  0xdd   :  { %v339_v22 = vpack.c.bf16 %v327_v21, %v324_v19 }
  0xdf   :  { %485 = vmatprep.mubr.msk.bf16.mxu1 %vm44_vm0, %v339_v22 }
  0xe0   :  { %486 = vmatmul.mubr.msk.bf16.vlgmr.msra.gmra.mxu1 %vm44_vm0, %v340_v23 }
 0x190   :  { %v463_v24 = vpop.f32.mrf.mxu1 }
 0x191   :  { %165 = vst [vmem:[#allocation2 + $0x10] sm:$0xff] %v463_v24 }
 0x192   :  { %v148_v25 = vpop.f32.mrf.mxu1 }
 0x193   :  { %163 = vst [vmem:[#allocation2] sm:$0xff] %v148_v25 }
 0x194   :  { %v464_v26 = vpop.f32.mrf.mxu1 }
 0x195   :  { %166 = vst [vmem:[#allocation2 + $0x18] sm:$0xff] %v464_v26 }
 0x196   :  { %v151_v27 = vpop.f32.mrf.mxu1 }
 0x197   :  { %164 = vst [vmem:[#allocation2 + $0x8] sm:$0xff] %v151_v27 }
 0x198   :  { %v475_v28 = vpop.f32.mrf.mxu1 }
 0x199   :  { %282 = vst [vmem:[#allocation2 + $0x30] sm:$0xff] %v475_v28 }
 0x19a   :  { %v264_v29 = vpop.f32.mrf.mxu1 }
 0x19b   :  { %280 = vst [vmem:[#allocation2 + $0x20] sm:$0xff] %v264_v29 }
 0x19c   :  { %v476_v30 = vpop.f32.mrf.mxu1 }
 0x19d   :  { %283 = vst [vmem:[#allocation2 + $0x38] sm:$0xff] %v476_v30 }
 0x19e   :  { %v267_v31 = vpop.f32.mrf.mxu1 }
 0x19f   :  { %281 = vst [vmem:[#allocation2 + $0x28] sm:$0xff] %v267_v31 }
 0x1a0   :  { %v487_v32 = vpop.f32.mrf.mxu1 }
 0x1a1   :  { %399 = vst [vmem:[#allocation2 + $0x50] sm:$0xff] %v487_v32 }
 0x1a2   :  { %v381_v33 = vpop.f32.mrf.mxu1 }
 0x1a3   :  { %397 = vst [vmem:[#allocation2 + $0x40] sm:$0xff] %v381_v33 }
 0x1a4   :  { %v488_v34 = vpop.f32.mrf.mxu1 }
 0x1a5   :  { %400 = vst [vmem:[#allocation2 + $0x58] sm:$0xff] %v488_v34 }
 0x1a6   :  { %v384_v35 = vpop.f32.mrf.mxu1 }
 0x1a7   :  { %398 = vst [vmem:[#allocation2 + $0x48] sm:$0xff] %v384_v35 }
 0x1a8   :  { %509 = shalt.err (!%p506_p4)
}
 0x1a9   :  { %s521_s24 = smov 128   ;;  %s522_s25 = smov 8  }
 0x1aa   :  { %412 = dma.vmem_to_hbm [thread:$0]  %s407_s2, 1536, %s579_s3, [#allocation3], %s521_s24, %s521_s24, %s522_s25  }
 0x1ab   :  { %518 = dma.done.wait [#allocation3], 1536  }
 0x1ac   :  { %519 = vsyncadd [#allocation3], 4294965760 }
 0x1ad   :  { %416 = vsyncpa [#allocation3], 1 }

</bundles_post_ra>
